<compile_context>
chip_gen: v6e
topology: v6e:2x2x1
jax: 0.10.0
libtpu: 0.0.40
codegen_flags: <defaults>
</compile_context>

<pallas_src>
import functools

import jax
import jax.numpy as jnp
from jax.experimental import pallas as pl
from jax.experimental.pallas import tpu as pltpu


def _cdiv(a, b):
    return (a + b - 1) // b


def _round_up(x, m):
    return _cdiv(x, m) * m


def _choose_tile(dim, align, cap, min_tiles=1):
    """Pick an `align`-aligned tile <= cap that minimizes padding of `dim`."""
    cap = max(align, (cap // align) * align)
    num = max(_cdiv(dim, cap), min_tiles)
    tile = _round_up(_cdiv(dim, num), align)
    return tile, tile * num  # (tile_size, padded_dim)


# ----------------------------------------------------------------------------
# Kernels
# ----------------------------------------------------------------------------
def _linear_kernel_single_k(x_ref, w_ref, b_ref, o_ref):
    # x_ref: (tm, K)  w_ref: (K, tn)  b_ref: (1, tn)  o_ref: (tm, tn)
    o_ref[...] = (
        jnp.dot(x_ref[...], w_ref[...], preferred_element_type=jnp.float32)
        + b_ref[...]
    ).astype(o_ref.dtype)


def _linear_kernel_multi_k(x_ref, w_ref, b_ref, o_ref, acc_ref):
    # x_ref: (tm, tk)  w_ref: (tk, tn)  b_ref: (1, tn)
    # o_ref: (tm, tn)  acc_ref: (tm, tn) f32 scratch, resident across K axis.
    k = pl.program_id(2)

    @pl.when(k == 0)
    def _():
        # Seed the accumulator with the broadcast bias: saves a zero-fill and
        # the epilogue add.
        acc_ref[...] = jnp.broadcast_to(
            b_ref[...].astype(jnp.float32), acc_ref.shape
        )

    acc_ref[...] += jnp.dot(
        x_ref[...], w_ref[...], preferred_element_type=jnp.float32
    )

    @pl.when(k == pl.num_programs(2) - 1)
    def _():
        o_ref[...] = acc_ref[...].astype(o_ref.dtype)


# ----------------------------------------------------------------------------
# pallas_call wrapper (shapes are static at trace time)
# ----------------------------------------------------------------------------
def _linear_pallas(x_p, w_p, b_p, *, tm, tn, tk, out_dtype):
    m_pad, k_pad = x_p.shape
    _, n_pad = w_p.shape
    gm, gn, gk = m_pad // tm, n_pad // tn, k_pad // tk

    # Double-buffered inputs/outputs + f32 accumulator, with 2x headroom.
    vmem_est = 4 * (2 * tm * tk + 2 * tk * tn + 2 * tm * tn + tm * tn + 2 * tn)
    vmem_limit = int(min(64 * 1024 * 1024, max(2 * vmem_est, 16 * 1024 * 1024)))

    if gk == 1:
        # Single K tile: no accumulator scratch, no K grid axis.
        return pl.pallas_call(
            _linear_kernel_single_k,
            out_shape=jax.ShapeDtypeStruct((m_pad, n_pad), out_dtype),
            grid_spec=pltpu.PrefetchScalarGridSpec(
                num_scalar_prefetch=0,
                grid=(gm, gn),
                in_specs=[
                    pl.BlockSpec((tm, k_pad), lambda i, j: (i, 0)),   # x
                    pl.BlockSpec((k_pad, tn), lambda i, j: (0, j)),   # W (K, N)
                    pl.BlockSpec((1, tn), lambda i, j: (0, j)),       # bias
                ],
                out_specs=pl.BlockSpec((tm, tn), lambda i, j: (i, j)),
            ),
            compiler_params=pltpu.CompilerParams(
                dimension_semantics=("parallel", "parallel"),
                vmem_limit_bytes=vmem_limit,
            ),
        )(x_p, w_p, b_p)

    return pl.pallas_call(
        _linear_kernel_multi_k,
        out_shape=jax.ShapeDtypeStruct((m_pad, n_pad), out_dtype),
        grid_spec=pltpu.PrefetchScalarGridSpec(
            num_scalar_prefetch=0,
            grid=(gm, gn, gk),
            in_specs=[
                pl.BlockSpec((tm, tk), lambda i, j, k: (i, k)),       # x
                pl.BlockSpec((tk, tn), lambda i, j, k: (k, j)),       # W (K, N)
                pl.BlockSpec((1, tn), lambda i, j, k: (0, j)),        # bias
            ],
            out_specs=pl.BlockSpec((tm, tn), lambda i, j, k: (i, j)),
            scratch_shapes=[pltpu.VMEM((tm, tn), jnp.float32)],
        ),
        compiler_params=pltpu.CompilerParams(
            dimension_semantics=("parallel", "parallel", "arbitrary"),
            vmem_limit_bytes=vmem_limit,
        ),
    )(x_p, w_p, b_p)


def _forward_impl(x, w_kn, b_row, *, in_size, out_size, k_pad, n_pad, tn, tk,
                  gn, tm_max):
    orig_shape = x.shape
    x2 = x.reshape(-1, in_size)
    batch = x2.shape[0]

    # Megacore hint: if there is only one N tile, split large batches over >= 2
    # M tiles so both v7x TensorCores get work.
    min_m_tiles = 2 if (gn == 1 and batch >= 1024) else 1
    tm, m_pad = _choose_tile(batch, 8, tm_max, min_tiles=min_m_tiles)

    # Only the activation is padded per call; parameters were padded at init.
    x_p = jnp.pad(x2, ((0, m_pad - batch), (0, k_pad - in_size)))

    out_p = _linear_pallas(x_p, w_kn, b_row, tm=tm, tn=tn, tk=tk,
                           out_dtype=x.dtype)
    out = out_p[:batch, :out_size]
    return out.reshape(*orig_shape[:-1], out_size)


# ----------------------------------------------------------------------------
# Module: equivalent of torch.nn.Linear(inputSize, outputSize) forward
# ----------------------------------------------------------------------------
class LinearRegressionPallas:
    def __init__(self, weight, bias, *, tm_max=512, tn_max=512, tk_max=1024):
        # weight: (outputSize, inputSize) float32 (PyTorch layout)
        # bias:   (outputSize,)           float32
        out_size, in_size = weight.shape
        tn, n_pad = _choose_tile(out_size, 128, tn_max)
        tk, k_pad = _choose_tile(in_size, 128, tk_max)

        # One-time parameter prep: pad + transpose to (K, N) so the kernel does
        # a native NN contraction (no in-kernel weight transpose).
        w_kn = jnp.pad(
            weight.T.astype(jnp.float32),
            ((0, k_pad - in_size), (0, n_pad - out_size)),
        )
        b_row = jnp.pad(bias.astype(jnp.float32),
                        (0, n_pad - out_size)).reshape(1, n_pad)
        self._w_kn = jax.device_put(w_kn)
        self._b_row = jax.device_put(b_row)

        self._forward = jax.jit(
            functools.partial(
                _forward_impl,
                in_size=in_size, out_size=out_size,
                k_pad=k_pad, n_pad=n_pad, tn=tn, tk=tk,
                gn=n_pad // tn, tm_max=tm_max,
            )
        )

    def __call__(self, x):
        return self._forward(x, self._w_kn, self._b_row)


if __name__ == "__main__":
    key = jax.random.PRNGKey(0)

    # --- Shipped module config: linearRegression(inputSize=32, outputSize=16)
    input_size, output_size, batch = 32, 16, 8
    kx, kw, kb, kx2, kw2, kb2 = jax.random.split(key, 6)

    bound = 1.0 / (input_size ** 0.5)
    weight = jax.random.uniform(
        kw, (output_size, input_size), jnp.float32, minval=-bound, maxval=bound
    )
    bias = jax.random.uniform(
        kb, (output_size,), jnp.float32, minval=-bound, maxval=bound
    )
    x = jax.random.normal(kx, (batch, input_size), jnp.float32)

    model = LinearRegressionPallas(weight, bias)
    out = jax.block_until_ready(model(x))
    ref = x @ weight.T + bias
    assert out.shape == (batch, output_size)
    assert jnp.allclose(out, ref, atol=1e-5, rtol=1e-5)

    # --- Second small config exercising the K-tiled accumulator path
    in2, out2, batch2 = 256, 24, 24
    bound2 = 1.0 / (in2 ** 0.5)
    weight2 = jax.random.uniform(
        kw2, (out2, in2), jnp.float32, minval=-bound2, maxval=bound2
    )
    bias2 = jax.random.uniform(
        kb2, (out2,), jnp.float32, minval=-bound2, maxval=bound2
    )
    x2 = jax.random.normal(kx2, (batch2, in2), jnp.float32)

    model2 = LinearRegressionPallas(weight2, bias2, tk_max=128)  # forces gk=2
    out2_val = jax.block_until_ready(model2(x2))
    ref2 = x2 @ weight2.T + bias2
    assert out2_val.shape == (batch2, out2)
    assert jnp.allclose(out2_val, ref2, atol=1e-4, rtol=1e-4)

    print("KERNEL_OK")
</pallas_src>

<mosaic_0001>
module attributes {stable_mosaic.version = 11 : i64} {
  func.func @_linear_kernel_single_k(%arg0: i32, %arg1: i32, %arg2: memref<8x128xf32, #tpu.memory_space<vmem>>, %arg3: memref<128x128xf32, #tpu.memory_space<vmem>>, %arg4: memref<1x128xf32, #tpu.memory_space<vmem>>, %arg5: memref<8x128xf32, #tpu.memory_space<vmem>>) attributes {dimension_semantics = [#tpu.dimension_semantics<parallel>, #tpu.dimension_semantics<parallel>], iteration_bounds = array<i64: 1, 1>, scalar_prefetch = 0 : i64, scratch_operands = 0 : i64, tpu.core_type = #tpu.core_type<tc>, window_params = [{transform_indices = @transform_0, window_bounds = array<i64: 8, 128>}, {transform_indices = @transform_1, window_bounds = array<i64: 128, 128>}, {transform_indices = @transform_2, window_bounds = array<i64: 1, 128>}, {transform_indices = @transform_3, window_bounds = array<i64: 8, 128>}]} {
    %c0 = arith.constant 0 : index
    %c0_0 = arith.constant 0 : index
    %0 = vector.load %arg2[%c0, %c0_0] : memref<8x128xf32, #tpu.memory_space<vmem>>, vector<8x128xf32>
    %c0_1 = arith.constant 0 : index
    %c0_2 = arith.constant 0 : index
    %1 = vector.load %arg3[%c0_1, %c0_2] : memref<128x128xf32, #tpu.memory_space<vmem>>, vector<128x128xf32>
    %cst = arith.constant dense<0.000000e+00> : vector<8x128xf32>
    %2 = tpu.matmul %0, %1, %cst {dimension_numbers = #tpu.dot_dimension_numbers<[1], [0], [0], [1], [0, 0, 1, 1], [], []>} : vector<8x128xf32>, vector<128x128xf32>, vector<8x128xf32> -> vector<8x128xf32>
    %c0_3 = arith.constant 0 : index
    %c0_4 = arith.constant 0 : index
    %3 = vector.load %arg4[%c0_3, %c0_4] : memref<1x128xf32, #tpu.memory_space<vmem>>, vector<1x128xf32>
    %4 = vector.broadcast %3 : vector<1x128xf32> to vector<8x128xf32>
    %5 = arith.addf %2, %4 : vector<8x128xf32>
    %c0_5 = arith.constant 0 : index
    %c0_6 = arith.constant 0 : index
    %6 = vector.load %arg5[%c0_5, %c0_6] : memref<8x128xf32, #tpu.memory_space<vmem>>, vector<8x128xf32>
    tpu.vector_store %arg5[%c0_5, %c0_6], %5 {strides = array<i32>} : memref<8x128xf32, #tpu.memory_space<vmem>>, vector<8x128xf32>,
    return
  }
  func.func @transform_0(%arg0: i32, %arg1: i32) -> (i32, i32) {
    %c0_i32 = arith.constant 0 : i32
    %c0_i32_0 = arith.constant 0 : i32
    return %arg0, %c0_i32 : i32, i32
  }
  func.func @transform_1(%arg0: i32, %arg1: i32) -> (i32, i32) {
    %c0_i32 = arith.constant 0 : i32
    %c0_i32_0 = arith.constant 0 : i32
    return %c0_i32, %arg1 : i32, i32
  }
  func.func @transform_2(%arg0: i32, %arg1: i32) -> (i32, i32) {
    %c0_i32 = arith.constant 0 : i32
    %c0_i32_0 = arith.constant 0 : i32
    return %c0_i32, %arg1 : i32, i32
  }
  func.func @transform_3(%arg0: i32, %arg1: i32) -> (i32, i32) {
    %c0_i32 = arith.constant 0 : i32
    return %arg0, %arg1 : i32, i32
  }
}

</mosaic_0001>

<bundles_post_ra>
// kernel: _forward_impl.1
= control target key start
LH: loop header
LB: loop body
LE: loop exit
PB: predicated region body
PF: predicated region fallthrough
CT: control target
= control target key end

     0   :  { %8 = vsyncpa [#allocation3], 0  ;;  %s280_s0 = inlined_call_operand.vmem [shape: f32[8,128], index: 0, kind: input, shape index: {}]   ;;  %s281_s1 = inlined_call_operand.hbm [shape: f32[128,128], index: 1, kind: input, shape index: {}]   ;;  %s282_s2 = inlined_call_operand.vmem [shape: f32[1,128], index: 2, kind: input, shape index: {}]   ;;  %s283_s3 = inlined_call_operand.hbm [shape: f32[8,128], index: 3, kind: output, shape index: {}]  }
   0x1   :  { %9 = vsyncpa [#allocation4], 0  ;;  %s242_s12 = smov [#allocation2]  }
   0x2   :  { %s17_s13 = sshll.u32 %s242_s12, 4  ;;  %s18_s13 = int_to_ptr.vmem [resolvable:$true] %s17_s13 }
   0x3   :  { %s206_s14 = scalar_lea.vmem %s18_s13, 2048  ;;  %p211_p1 = scmp.lt.s32.totalorder %s18_s13, %s18_s13 }
   0x4   :  { %p207_p0 = scmp.ne.s32.totalorder %s18_s13, %s206_s14  ;;  %p212_p2 = scmp.lt.s32.totalorder %s206_s14, %s206_s14 }
   0x6   :  { %p213_p3 = por %p212_p2, %p211_p1 }
   0x8   :  { %p214_p4 = pnand %p213_p3, %p207_p0 }
   0xa   :  { %217 = shalt.err (!%p214_p4)
}
   0xb   :  { %s243_s15 = smov 128   ;;  %s244_s16 = smov 8  }
   0xc   :  { %23 = dma.hbm_to_vmem [thread:$0]  %s281_s1, 2048, %s18_s13, [#allocation3], %s243_s15, %s243_s15, %s244_s16  }
   0xd   :  { %238 = dma.done.wait [#allocation3], 2048  }
   0xe   :  { %239 = vsyncadd [#allocation3], 4294965248  ;;  %v245_v0 = vmov 0.0   ;;  %vm246_vm0 = vmmov 0   ;;  %v45_v1 = vld [vmem:[#allocation2 + $0x78] sm:$0xff]  ;;  %v44_v2 = vld [vmem:[#allocation2 + $0x70] sm:$0xff] }
   0xf   :  { %157 = vmatprep.subr.mxu0 %v245_v0  ;;  %189 = vmatprep.mubr.msk.f32.mxu0 %vm246_vm0, %v245_v0  ;;  %v43_v3 = vld [vmem:[#allocation2 + $0x68] sm:$0xff]  ;;  %v42_v4 = vld [vmem:[#allocation2 + $0x60] sm:$0xff]  ;;  %v41_v5 = vld [vmem:[#allocation2 + $0x58] sm:$0xff]  ;;  %s247_s22 = smov [#allocation5]  }
  0x10   :  { %158 = vmatpush3.msra.mxu0 %v45_v1  ;;  %v40_v6 = vld [vmem:[#allocation2 + $0x50] sm:$0xff]  ;;  %v39_v7 = vld [vmem:[#allocation2 + $0x48] sm:$0xff]  ;;  %v38_v8 = vld [vmem:[#allocation2 + $0x40] sm:$0xff]  ;;  %s130_s23 = sshll.u32 %s247_s22, 4  ;;  %s131_s23 = int_to_ptr.vmem [resolvable:$true] %s130_s23 }
  0x11   :  { %159 = vmatprep.subr.mxu0 %v245_v0  ;;  %v37_v9 = vld [vmem:[#allocation2 + $0x38] sm:$0xff]  ;;  %v36_v10 = vld [vmem:[#allocation2 + $0x30] sm:$0xff]  ;;  %v35_v11 = vld [vmem:[#allocation2 + $0x28] sm:$0xff]  ;;  %s218_s24 = scalar_lea.vmem %s131_s23, 128  ;;  %p223_p6 = scmp.lt.s32.totalorder %s131_s23, %s131_s23 }
  0x12   :  { %160 = vmatpush3.msra.mxu0 %v44_v2  ;;  %v34_v12 = vld [vmem:[#allocation2 + $0x20] sm:$0xff]  ;;  %v33_v13 = vld [vmem:[#allocation2 + $0x18] sm:$0xff]  ;;  %v32_v14 = vld [vmem:[#allocation2 + $0x10] sm:$0xff]  ;;  %p219_p5 = scmp.ne.s32.totalorder %s131_s23, %s218_s24  ;;  %p224_p7 = scmp.lt.s32.totalorder %s218_s24, %s218_s24 }
  0x13   :  { %161 = vmatprep.subr.mxu0 %v245_v0  ;;  %v31_v15 = vld [vmem:[#allocation2 + $0x8] sm:$0xff]  ;;  %v30_v16 = vld [vmem:[#allocation2] sm:$0xff] }
  0x14   :  { %162 = vmatpush3.msra.mxu0 %v43_v3  ;;  %v29_v17 = vld [vmem:[%s280_s0] sm:$0xff]  ;;  %p225_p8 = por %p224_p7, %p223_p6 }
  0x15   :  { %163 = vmatprep.subr.mxu0 %v245_v0  ;;  %v139_v18 = vld [vmem:[%s282_s2] ss:$0 sm:$0xff] }
  0x16   :  { %164 = vmatpush3.msra.mxu0 %v42_v4  ;;  %p226_p9 = pnand %p225_p8, %p219_p5 }
  0x17   :  { %165 = vmatprep.subr.mxu0 %v245_v0 }
  0x18   :  { %166 = vmatpush3.msra.mxu0 %v41_v5 }
  0x19   :  { %167 = vmatprep.subr.mxu0 %v245_v0 }
  0x1a   :  { %168 = vmatpush3.msra.mxu0 %v40_v6 }
  0x1b   :  { %169 = vmatprep.subr.mxu0 %v245_v0 }
  0x1c   :  { %170 = vmatpush3.msra.mxu0 %v39_v7 }
  0x1d   :  { %171 = vmatprep.subr.mxu0 %v245_v0 }
  0x1e   :  { %172 = vmatpush3.msra.mxu0 %v38_v8 }
  0x1f   :  { %173 = vmatprep.subr.mxu0 %v245_v0 }
  0x20   :  { %174 = vmatpush3.msra.mxu0 %v37_v9 }
  0x21   :  { %175 = vmatprep.subr.mxu0 %v245_v0 }
  0x22   :  { %176 = vmatpush3.msra.mxu0 %v36_v10 }
  0x23   :  { %177 = vmatprep.subr.mxu0 %v245_v0 }
  0x24   :  { %178 = vmatpush3.msra.mxu0 %v35_v11 }
  0x25   :  { %179 = vmatprep.subr.mxu0 %v245_v0 }
  0x26   :  { %180 = vmatpush3.msra.mxu0 %v34_v12 }
  0x27   :  { %181 = vmatprep.subr.mxu0 %v245_v0 }
  0x28   :  { %182 = vmatpush3.msra.mxu0 %v33_v13 }
  0x29   :  { %183 = vmatprep.subr.mxu0 %v245_v0 }
  0x2a   :  { %184 = vmatpush3.msra.mxu0 %v32_v14 }
  0x2b   :  { %185 = vmatprep.subr.mxu0 %v245_v0 }
  0x2c   :  { %186 = vmatpush3.msra.mxu0 %v31_v15 }
  0x2d   :  { %187 = vmatprep.subr.mxu0 %v245_v0 }
  0x2e   :  { %188 = vmatpush3.msra.mxu0 %v30_v16 }
  0x2f   :  { %190 = vmatmul.mubr.f32.vlgmr.msra.gmra.mxu0 %v29_v17 }
  0xef   :  { %v119_v19 = vpop.f32.mrf.mxu0 }
  0xf0   :  { %v120_v20 = vadd.f32 %v139_v18, %v119_v19 }
  0xf1   :  { %v191_v21 = vpop.f32.mrf.mxu0 }
  0xf2   :  { %123 = vst [vmem:[#allocation5] sm:$0xff] %v120_v20 }
  0xf3   :  { %229 = shalt.err (!%p226_p9)
}
  0xf4   :  { %133 = dma.vmem_to_hbm [thread:$0]  %s131_s23, 128, %s283_s3, [#allocation4]  }
  0xf5   :  { %240 = dma.done.wait [#allocation4], 128  }
  0xf6   :  { %241 = vsyncadd [#allocation4], 4294967168 }
  0xf7   :  { %137 = vsyncpa [#allocation3], 1 }
  0xf8   :  { %138 = vsyncpa [#allocation4], 1 }

</bundles_post_ra>
